<compile_context>
chip_gen: v6e
topology: v6e:2x2x1
jax: 0.10.0
libtpu: 0.0.40
codegen_flags: <defaults>
</compile_context>

<pallas_src>
import numpy as np
import jax
import jax.numpy as jnp
from jax.experimental import pallas as pl
from jax.experimental.pallas import tpu as pltpu


# ----------------------------------------------------------------------------- helpers
def _round_up(a, b):
    return (a + b - 1) // b * b


def _cdiv(a, b):
    return (a + b - 1) // b


def knn_group_idx(p, nsample):
    # TODO(synk): pointops.queryandgroup (batched CUDA kNN via offsets `o`) is
    # approximated by a brute-force single-batch kNN.  d2 is computed in GEMM form
    # (runs on the MXU, no (N, N, 3) broadcast blow-up).
    sq = jnp.sum(p * p, axis=-1)
    d2 = sq[:, None] + sq[None, :] - 2.0 * (p @ p.T)
    _, idx = jax.lax.top_k(-d2, nsample)
    return idx.astype(jnp.int32)


def calc_ppf(pc, nc, p_r, n_r):
    """JAX port of calc_ppf_gpu. pc/nc broadcast against p_r/n_r; returns (..., 4)."""
    vec_d = p_r - pc
    d = jnp.linalg.norm(vec_d, axis=-1, keepdims=True)

    def angle(a, b):
        y = jnp.cross(a, b)
        x_ = jnp.sum(a * b, axis=-1, keepdims=True)
        return jnp.arctan2(jnp.linalg.norm(y, axis=-1, keepdims=True), x_)

    nc_b = jnp.broadcast_to(nc, n_r.shape)
    a1 = angle(nc_b, vec_d)
    a2 = angle(n_r, vec_d)
    a3 = angle(nc_b, n_r)
    return jnp.concatenate([d, a1, a2, a3], axis=-1)


# ----------------------------------------------------------------------------- kernels
def _qkv_proj_kernel(x_ref, wq_ref, bq_ref, wk_ref, bk_ref, wv_ref, bv_ref,
                     q_ref, k_ref, v_ref):
    """Three lane-dense GEMMs: (TR, pack*Cin) @ (pack*Cin, pack*H) + bias."""
    f32 = jnp.float32
    x = x_ref[...]
    q_ref[...] = jnp.dot(x, wq_ref[...], preferred_element_type=f32) + bq_ref[...]
    k_ref[...] = jnp.dot(x, wk_ref[...], preferred_element_type=f32) + bk_ref[...]
    v_ref[...] = jnp.dot(x, wv_ref[...], preferred_element_type=f32) + bv_ref[...]


def _make_attention_kernel(approx_recip):
    def kernel(q_ref, k_ref, v_ref, ppf_ref,
               wp1_ref, bp1_ref, wp2_ref, bp2_ref,
               bsum_ref, wo_ref, bo_ref,
               out_ref, u_ref, pe_ref, s_ref):
        f32 = jnp.float32
        TR, HP = q_ref.shape          # packed rows per tile, packed hidden width
        K = k_ref.shape[0]            # number of neighbours

        # ---- PPF positional MLP ------------------------------------------------
        # layer 1 (+ReLU) per neighbour into the staging scratch (contraction depth
        # is only 4*pack, so these stay small); layer 2 as ONE big-M GEMM.
        wp1 = wp1_ref[...]
        bp1 = bp1_ref[...]
        for j in range(K):
            u_ref[j * TR:(j + 1) * TR, :] = jnp.maximum(
                jnp.dot(ppf_ref[j], wp1, preferred_element_type=f32) + bp1, 0.0)
        pe_ref[...] = (
            jnp.dot(u_ref[...], wp2_ref[...], preferred_element_type=f32)
            + bp2_ref[...])

        # ---- pass 1: stage q*(k+pe); ONE batched same-head score GEMM -----------
        # bsum is the block-diagonal "sum within (point, head) and broadcast back"
        # matrix with the 1/sqrt(hd) softmax scale already folded in (built once in
        # the wrapper, not per grid step).
        q = q_ref[...]
        for j in range(K):
            u_ref[j * TR:(j + 1) * TR, :] = (
                q * (k_ref[j] + pe_ref[j * TR:(j + 1) * TR, :]))
        s_ref[...] = jnp.dot(u_ref[...], bsum_ref[...], preferred_element_type=f32)

        # ---- pass 2: two-pass softmax over the K neighbours ---------------------
        m = s_ref[0:TR, :]
        for j in range(1, K):
            m = jnp.maximum(m, s_ref[j * TR:(j + 1) * TR, :])
        den = jnp.zeros((TR, HP), f32)
        acc = jnp.zeros((TR, HP), f32)
        for j in range(K):
            e = jnp.exp(s_ref[j * TR:(j + 1) * TR, :] - m)
            den = den + e
            acc = acc + e * (v_ref[j] + pe_ref[j * TR:(j + 1) * TR, :])

        if approx_recip:
            out = acc * pl.reciprocal(den, approx=True)   # EUP slot, ~1e-3 rel err
        else:
            out = acc / den

        # ---- output projection (lane-dense store) --------------------------------
        out_ref[...] = (
            jnp.dot(out, wo_ref[...], preferred_element_type=f32) + bo_ref[...])

    return kernel


# ----------------------------------------------------------------------------- wrapper
def ri_point_transformer_layer(pxon, params, *, nsample=16, num_heads=4, tile_m=512,
                               approx_softmax_recip=True):
    p, x, o, n, idx, ppf_r = pxon
    del o  # TODO(synk): batch offsets `o` ignored (single-batch brute-force kNN).
    N, c_in = x.shape
    hidden = params["wq"].shape[1]
    c_out = params["wo"].shape[1]
    assert hidden % num_heads == 0
    hd = hidden // num_heads
    f32 = jnp.float32
    K = nsample

    group_idx = knn_group_idx(p, nsample) if idx is None else idx
    gidx_t = jnp.transpose(group_idx)                            # (K, N) neighbour-major

    if ppf_r is None:
        ppf_knl = calc_ppf(p[None, :, :], n[None, :, :], p[gidx_t], n[gidx_t])  # (K,N,4)
        ppf_r = jnp.transpose(ppf_knl, (1, 0, 2))                # (N, K, 4) returned
    else:
        ppf_knl = jnp.transpose(ppf_r, (1, 0, 2))                # (K, N, 4)

    # ---- lane packing: P consecutive points per vreg row (HP = P*hidden = 128) ----
    P = 128 // hidden if (hidden < 128 and 128 % hidden == 0) else 1
    HP = hidden * P

    rows = _cdiv(N, P)
    TR = min(max(8, (tile_m // P) // 8 * 8), _round_up(rows, 8))
    # keep >= 2 grid steps when the cloud is big enough (v7x megacore shards the
    # single "parallel" grid axis across its two TensorCores)
    if rows >= 16 and _round_up(rows, TR) // TR < 2:
        TR = _round_up(_cdiv(rows, 2), 8)
    R_pad = _round_up(rows, TR)
    n_pad = R_pad * P
    n_tiles = R_pad // TR
    pad = n_pad - N

    x_p = jnp.pad(x, ((0, pad), (0, 0))) if pad else x
    x_pk = x_p.reshape(R_pad, P * c_in)                          # free bitcast reshape

    # packed (block-diagonal) weights / tiled biases, built once in the wrapper
    eye_p = jnp.eye(P, dtype=f32)

    def packw(w):
        return jnp.kron(eye_p, w.astype(f32))

    def packb(b):
        return jnp.tile(b.astype(f32), (1, P))

    wq_p, bq_p = packw(params["wq"]), packb(params["bq"])
    wk_p, bk_p = packw(params["wk"]), packb(params["bk"])
    wv_p, bv_p = packw(params["wv"]), packb(params["bv"])
    wp1_p, bp1_p = packw(params["wp1"]), packb(params["bp1"])
    wp2_p, bp2_p = packw(params["wp2"]), packb(params["bp2"])
    wo_p, bo_p = packw(params["wo"]), packb(params["bo"])

    # block-diagonal "same (point, head)" matrix with the softmax scale folded in;
    # hoisted out of the kernel (built once here instead of per grid step)
    lane = np.arange(HP)
    bsum = jnp.asarray(
        ((lane[:, None] // hd) == (lane[None, :] // hd)).astype(np.float32)
        / np.sqrt(hd))

    # working set (double-buffered blocks + 3 scratches) is ~8-12 MB at tile_m=512,
    # so 32 MiB leaves ample headroom on v5e/v6e (128 MiB) and v7x (64 MiB)
    compiler_params = pltpu.CompilerParams(
        dimension_semantics=("parallel",),
        vmem_limit_bytes=32 * 1024 * 1024,
    )

    # ---- kernel 1: fused lane-dense q/k/v projection (hoisted out of the K loop) ----
    q_pk, k_pk, v_pk = pl.pallas_call(
        _qkv_proj_kernel,
        out_shape=(jax.ShapeDtypeStruct((R_pad, HP), f32),
                   jax.ShapeDtypeStruct((R_pad, HP), f32),
                   jax.ShapeDtypeStruct((R_pad, HP), f32)),
        grid_spec=pltpu.PrefetchScalarGridSpec(
            num_scalar_prefetch=0,
            grid=(n_tiles,),
            in_specs=[
                pl.BlockSpec((TR, P * c_in), lambda i: (i, 0)),     # x packed
                pl.BlockSpec((P * c_in, HP), lambda i: (0, 0)),     # wq packed
                pl.BlockSpec((1, HP), lambda i: (0, 0)),
                pl.BlockSpec((P * c_in, HP), lambda i: (0, 0)),     # wk packed
                pl.BlockSpec((1, HP), lambda i: (0, 0)),
                pl.BlockSpec((P * c_in, HP), lambda i: (0, 0)),     # wv packed
                pl.BlockSpec((1, HP), lambda i: (0, 0)),
            ],
            out_specs=[pl.BlockSpec((TR, HP), lambda i: (i, 0))] * 3,
        ),
        compiler_params=compiler_params,
    )(x_pk, wq_p, bq_p, wk_p, bk_p, wv_p, bv_p)

    # ---- gather projected k/v per neighbour (point-major rows), then free re-pack ----
    # TODO(synk): for moderate N the projected k/v could instead stay resident in VMEM
    # with an in-kernel row gather, removing this HBM round trip of the K x larger arrays.
    gidx_tp = jnp.pad(gidx_t, ((0, 0), (0, pad))) if pad else gidx_t
    k_full = k_pk.reshape(n_pad, hidden)                         # free bitcast reshape
    v_full = v_pk.reshape(n_pad, hidden)
    k_nbr = k_full[gidx_tp].reshape(K, R_pad, HP)                # (K, R, HP) packed
    v_nbr = v_full[gidx_tp].reshape(K, R_pad, HP)

    ppf_p = jnp.pad(ppf_knl, ((0, 0), (0, pad), (0, 0))) if pad else ppf_knl
    ppf_pk = ppf_p.reshape(K, R_pad, 4 * P)                      # (K, R, 4*pack) packed

    # ---- kernel 2: attention over the K neighbours ----
    kernel = _make_attention_kernel(approx_softmax_recip)
    out_pk = pl.pallas_call(
        kernel,
        out_shape=jax.ShapeDtypeStruct((R_pad, P * c_out), f32),
        grid_spec=pltpu.PrefetchScalarGridSpec(
            num_scalar_prefetch=0,
            grid=(n_tiles,),
            in_specs=[
                pl.BlockSpec((TR, HP), lambda i: (i, 0)),            # q packed
                pl.BlockSpec((K, TR, HP), lambda i: (0, i, 0)),      # gathered k packed
                pl.BlockSpec((K, TR, HP), lambda i: (0, i, 0)),      # gathered v packed
                pl.BlockSpec((K, TR, 4 * P), lambda i: (0, i, 0)),   # ppf packed
                pl.BlockSpec((4 * P, HP), lambda i: (0, 0)),         # wp1 packed
                pl.BlockSpec((1, HP), lambda i: (0, 0)),             # bp1
                pl.BlockSpec((HP, HP), lambda i: (0, 0)),            # wp2 packed
                pl.BlockSpec((1, HP), lambda i: (0, 0)),             # bp2
                pl.BlockSpec((HP, HP), lambda i: (0, 0)),            # bsum (scale folded)
                pl.BlockSpec((HP, P * c_out), lambda i: (0, 0)),     # wo packed
                pl.BlockSpec((1, P * c_out), lambda i: (0, 0)),      # bo
            ],
            out_specs=pl.BlockSpec((TR, P * c_out), lambda i: (i, 0)),
            scratch_shapes=[pltpu.VMEM((K * TR, HP), f32),           # u (staging)
                            pltpu.VMEM((K * TR, HP), f32),           # pe
                            pltpu.VMEM((K * TR, HP), f32)],          # scores
        ),
        compiler_params=compiler_params,
    )(q_pk, k_nbr, v_nbr, ppf_pk,
      wp1_p, bp1_p, wp2_p, bp2_p, bsum, wo_p, bo_p)

    x_out = out_pk.reshape(n_pad, c_out)[:N]                     # free unpack reshape
    return [x_out, group_idx, ppf_r]


# ----------------------------------------------------------------------------- params
def init_params(key, in_planes, out_planes, hidden):
    def linear(k, fin, fout):
        kw, kb = jax.random.split(k)
        bound = 1.0 / np.sqrt(fin)
        w = jax.random.uniform(kw, (fin, fout), jnp.float32, -bound, bound)
        b = jax.random.uniform(kb, (1, fout), jnp.float32, -bound, bound)
        return w, b

    ks = jax.random.split(key, 6)
    wq, bq = linear(ks[0], in_planes, hidden)
    wk, bk = linear(ks[1], in_planes, hidden)
    wv, bv = linear(ks[2], in_planes, hidden)
    wp1, bp1 = linear(ks[3], 4, hidden)
    wp2, bp2 = linear(ks[4], hidden, hidden)
    wo, bo = linear(ks[5], hidden, out_planes)
    return dict(wq=wq, bq=bq, wk=wk, bk=bk, wv=wv, bv=bv,
                wp1=wp1, bp1=bp1, wp2=wp2, bp2=bp2, wo=wo, bo=bo)


# ----------------------------------------------------------------------------- reference (plain JAX)
def reference_transformer(x, group_idx, ppf, params, num_heads):
    q = x @ params["wq"] + params["bq"][0]
    k = (x @ params["wk"] + params["bk"][0])[group_idx]
    v = (x @ params["wv"] + params["bv"][0])[group_idx]
    pe = jax.nn.relu(ppf @ params["wp1"] + params["bp1"][0]) @ params["wp2"] + params["bp2"][0]
    k = k + pe
    v = v + pe
    npts, K, H = k.shape
    hd = H // num_heads
    qh = q.reshape(npts, num_heads, hd)
    kh = k.reshape(npts, K, num_heads, hd)
    vh = v.reshape(npts, K, num_heads, hd)
    s = jnp.einsum("nhd,nkhd->nkh", qh, kh) / np.sqrt(hd)
    a = jax.nn.softmax(s, axis=1)
    out = jnp.einsum("nkh,nkhd->nhd", a, vh).reshape(npts, H)
    return out @ params["wo"] + params["bo"][0]


# ----------------------------------------------------------------------------- main
if __name__ == "__main__":
    N, in_planes, out_planes = 64, 32, 32
    num_heads, nsample, factor = 4, 16, 1
    hidden = min(out_planes, 256 * factor)

    key = jax.random.PRNGKey(0)
    kp, kn, kx, kparams = jax.random.split(key, 4)
    p = jax.random.normal(kp, (N, 3), jnp.float32)
    nrm = jax.random.normal(kn, (N, 3), jnp.float32)
    nrm = nrm / jnp.linalg.norm(nrm, axis=-1, keepdims=True)
    x = jax.random.normal(kx, (N, in_planes), jnp.float32)
    o = jnp.array([N], jnp.int32)

    params = init_params(kparams, in_planes, out_planes, hidden)

    x_out, group_idx, ppf_r = ri_point_transformer_layer(
        (p, x, o, nrm, None, None), params,
        nsample=nsample, num_heads=num_heads, tile_m=512)
    x_out = jax.block_until_ready(x_out)
    jax.block_until_ready(group_idx)
    jax.block_until_ready(ppf_r)

    assert x_out.shape == (N, out_planes)
    assert group_idx.shape == (N, nsample)
    assert ppf_r.shape == (N, nsample, 4)

    ref = reference_transformer(x, group_idx, ppf_r, params, num_heads)
    np.testing.assert_allclose(np.asarray(x_out), np.asarray(ref), rtol=2e-2, atol=2e-2)

    print("KERNEL_OK")
</pallas_src>

<mosaic_0001>
module attributes {stable_mosaic.version = 11 : i64} {
  func.func @_qkv_proj_kernel(%arg0: i32, %arg1: memref<8x128xf32, #tpu.memory_space<vmem>>, %arg2: memref<128x128xf32, #tpu.memory_space<vmem>>, %arg3: memref<1x128xf32, #tpu.memory_space<vmem>>, %arg4: memref<128x128xf32, #tpu.memory_space<vmem>>, %arg5: memref<1x128xf32, #tpu.memory_space<vmem>>, %arg6: memref<128x128xf32, #tpu.memory_space<vmem>>, %arg7: memref<1x128xf32, #tpu.memory_space<vmem>>, %arg8: memref<8x128xf32, #tpu.memory_space<vmem>>, %arg9: memref<8x128xf32, #tpu.memory_space<vmem>>, %arg10: memref<8x128xf32, #tpu.memory_space<vmem>>) attributes {dimension_semantics = [#tpu.dimension_semantics<parallel>], iteration_bounds = array<i64: 2>, scalar_prefetch = 0 : i64, scratch_operands = 0 : i64, tpu.core_type = #tpu.core_type<tc>, window_params = [{transform_indices = @transform_0, window_bounds = array<i64: 8, 128>}, {pipeline_mode = #tpu.pipeline_mode<synchronous>, transform_indices = @transform_1, window_bounds = array<i64: 128, 128>}, {pipeline_mode = #tpu.pipeline_mode<synchronous>, transform_indices = @transform_2, window_bounds = array<i64: 1, 128>}, {pipeline_mode = #tpu.pipeline_mode<synchronous>, transform_indices = @transform_3, window_bounds = array<i64: 128, 128>}, {pipeline_mode = #tpu.pipeline_mode<synchronous>, transform_indices = @transform_4, window_bounds = array<i64: 1, 128>}, {pipeline_mode = #tpu.pipeline_mode<synchronous>, transform_indices = @transform_5, window_bounds = array<i64: 128, 128>}, {pipeline_mode = #tpu.pipeline_mode<synchronous>, transform_indices = @transform_6, window_bounds = array<i64: 1, 128>}, {transform_indices = @transform_7, window_bounds = array<i64: 8, 128>}, {transform_indices = @transform_8, window_bounds = array<i64: 8, 128>}, {transform_indices = @transform_9, window_bounds = array<i64: 8, 128>}]} {
    %c0 = arith.constant 0 : index
    %c0_0 = arith.constant 0 : index
    %0 = vector.load %arg1[%c0, %c0_0] : memref<8x128xf32, #tpu.memory_space<vmem>>, vector<8x128xf32>
    %c0_1 = arith.constant 0 : index
    %c0_2 = arith.constant 0 : index
    %1 = vector.load %arg2[%c0_1, %c0_2] : memref<128x128xf32, #tpu.memory_space<vmem>>, vector<128x128xf32>
    %cst = arith.constant dense<0.000000e+00> : vector<8x128xf32>
    %2 = tpu.matmul %0, %1, %cst {dimension_numbers = #tpu.dot_dimension_numbers<[1], [0], [0], [1], [0, 0, 1, 1], [], []>} : vector<8x128xf32>, vector<128x128xf32>, vector<8x128xf32> -> vector<8x128xf32>
    %c0_3 = arith.constant 0 : index
    %c0_4 = arith.constant 0 : index
    %3 = vector.load %arg3[%c0_3, %c0_4] : memref<1x128xf32, #tpu.memory_space<vmem>>, vector<1x128xf32>
    %4 = vector.broadcast %3 : vector<1x128xf32> to vector<8x128xf32>
    %5 = arith.addf %2, %4 : vector<8x128xf32>
    %c0_5 = arith.constant 0 : index
    %c0_6 = arith.constant 0 : index
    %6 = vector.load %arg8[%c0_5, %c0_6] : memref<8x128xf32, #tpu.memory_space<vmem>>, vector<8x128xf32>
    tpu.vector_store %arg8[%c0_5, %c0_6], %5 {strides = array<i32>} : memref<8x128xf32, #tpu.memory_space<vmem>>, vector<8x128xf32>,
    %c0_7 = arith.constant 0 : index
    %c0_8 = arith.constant 0 : index
    %7 = vector.load %arg4[%c0_7, %c0_8] : memref<128x128xf32, #tpu.memory_space<vmem>>, vector<128x128xf32>
    %cst_9 = arith.constant dense<0.000000e+00> : vector<8x128xf32>
    %8 = tpu.matmul %0, %7, %cst_9 {dimension_numbers = #tpu.dot_dimension_numbers<[1], [0], [0], [1], [0, 0, 1, 1], [], []>} : vector<8x128xf32>, vector<128x128xf32>, vector<8x128xf32> -> vector<8x128xf32>
    %c0_10 = arith.constant 0 : index
    %c0_11 = arith.constant 0 : index
    %9 = vector.load %arg5[%c0_10, %c0_11] : memref<1x128xf32, #tpu.memory_space<vmem>>, vector<1x128xf32>
    %10 = vector.broadcast %9 : vector<1x128xf32> to vector<8x128xf32>
    %11 = arith.addf %8, %10 : vector<8x128xf32>
    %c0_12 = arith.constant 0 : index
    %c0_13 = arith.constant 0 : index
    %12 = vector.load %arg9[%c0_12, %c0_13] : memref<8x128xf32, #tpu.memory_space<vmem>>, vector<8x128xf32>
    tpu.vector_store %arg9[%c0_12, %c0_13], %11 {strides = array<i32>} : memref<8x128xf32, #tpu.memory_space<vmem>>, vector<8x128xf32>,
    %c0_14 = arith.constant 0 : index
    %c0_15 = arith.constant 0 : index
    %13 = vector.load %arg6[%c0_14, %c0_15] : memref<128x128xf32, #tpu.memory_space<vmem>>, vector<128x128xf32>
    %cst_16 = arith.constant dense<0.000000e+00> : vector<8x128xf32>
    %14 = tpu.matmul %0, %13, %cst_16 {dimension_numbers = #tpu.dot_dimension_numbers<[1], [0], [0], [1], [0, 0, 1, 1], [], []>} : vector<8x128xf32>, vector<128x128xf32>, vector<8x128xf32> -> vector<8x128xf32>
    %c0_17 = arith.constant 0 : index
    %c0_18 = arith.constant 0 : index
    %15 = vector.load %arg7[%c0_17, %c0_18] : memref<1x128xf32, #tpu.memory_space<vmem>>, vector<1x128xf32>
    %16 = vector.broadcast %15 : vector<1x128xf32> to vector<8x128xf32>
    %17 = arith.addf %14, %16 : vector<8x128xf32>
    %c0_19 = arith.constant 0 : index
    %c0_20 = arith.constant 0 : index
    %18 = vector.load %arg10[%c0_19, %c0_20] : memref<8x128xf32, #tpu.memory_space<vmem>>, vector<8x128xf32>
    tpu.vector_store %arg10[%c0_19, %c0_20], %17 {strides = array<i32>} : memref<8x128xf32, #tpu.memory_space<vmem>>, vector<8x128xf32>,
    return
  }
  func.func @transform_0(%arg0: i32) -> (i32, i32) {
    %c0_i32 = arith.constant 0 : i32
    %c0_i32_0 = arith.constant 0 : i32
    return %arg0, %c0_i32 : i32, i32
  }
  func.func @transform_1(%arg0: i32) -> (i32, i32) {
    %c0_i32 = arith.constant 0 : i32
    %c0_i32_0 = arith.constant 0 : i32
    %c0_i32_1 = arith.constant 0 : i32
    return %c0_i32, %c0_i32_0 : i32, i32
  }
  func.func @transform_2(%arg0: i32) -> (i32, i32) {
    %c0_i32 = arith.constant 0 : i32
    %c0_i32_0 = arith.constant 0 : i32
    %c0_i32_1 = arith.constant 0 : i32
    return %c0_i32, %c0_i32_0 : i32, i32
  }
  func.func @transform_3(%arg0: i32) -> (i32, i32) {
    %c0_i32 = arith.constant 0 : i32
    %c0_i32_0 = arith.constant 0 : i32
    %c0_i32_1 = arith.constant 0 : i32
    return %c0_i32, %c0_i32_0 : i32, i32
  }
  func.func @transform_4(%arg0: i32) -> (i32, i32) {
    %c0_i32 = arith.constant 0 : i32
    %c0_i32_0 = arith.constant 0 : i32
    %c0_i32_1 = arith.constant 0 : i32
    return %c0_i32, %c0_i32_0 : i32, i32
  }
  func.func @transform_5(%arg0: i32) -> (i32, i32) {
    %c0_i32 = arith.constant 0 : i32
    %c0_i32_0 = arith.constant 0 : i32
    %c0_i32_1 = arith.constant 0 : i32
    return %c0_i32, %c0_i32_0 : i32, i32
  }
  func.func @transform_6(%arg0: i32) -> (i32, i32) {
    %c0_i32 = arith.constant 0 : i32
    %c0_i32_0 = arith.constant 0 : i32
    %c0_i32_1 = arith.constant 0 : i32
    return %c0_i32, %c0_i32_0 : i32, i32
  }
  func.func @transform_7(%arg0: i32) -> (i32, i32) {
    %c0_i32 = arith.constant 0 : i32
    %c0_i32_0 = arith.constant 0 : i32
    return %arg0, %c0_i32 : i32, i32
  }
  func.func @transform_8(%arg0: i32) -> (i32, i32) {
    %c0_i32 = arith.constant 0 : i32
    %c0_i32_0 = arith.constant 0 : i32
    return %arg0, %c0_i32 : i32, i32
  }
  func.func @transform_9(%arg0: i32) -> (i32, i32) {
    %c0_i32 = arith.constant 0 : i32
    %c0_i32_0 = arith.constant 0 : i32
    return %arg0, %c0_i32 : i32, i32
  }
}

</mosaic_0001>

<bundles_post_ra>
// kernel: tpu_custom_call.1
= control target key start
LH: loop header
LB: loop body
LE: loop exit
PB: predicated region body
PF: predicated region fallthrough
CT: control target
= control target key end

     0   :  { %s1798_s0 = inlined_call_operand.hbm [shape: f32[16,128], index: 0, kind: input, shape index: {}]   ;;  %s1799_s1 = inlined_call_operand.hbm [shape: f32[128,128], index: 1, kind: input, shape index: {}]   ;;  %s1800_s2 = inlined_call_operand.vmem [shape: f32[1,128], index: 2, kind: input, shape index: {}]   ;;  %s1801_s3 = inlined_call_operand.hbm [shape: f32[128,128], index: 3, kind: input, shape index: {}]   ;;  %s1802_s4 = inlined_call_operand.vmem [shape: f32[1,128], index: 4, kind: input, shape index: {}]   ;;  %s1803_s5 = inlined_call_operand.hbm [shape: f32[128,128], index: 5, kind: input, shape index: {}]   ;;  %s1804_s6 = inlined_call_operand.vmem [shape: f32[1,128], index: 6, kind: input, shape index: {}]   ;;  %s1805_s7 = inlined_call_operand.hbm [shape: f32[16,128], index: 7, kind: output, shape index: {0}]   ;;  %s1806_s8 = inlined_call_operand.hbm [shape: f32[16,128], index: 8, kind: output, shape index: {1}]   ;;  %s1807_s9 = inlined_call_operand.hbm [shape: f32[16,128], index: 9, kind: output, shape index: {2}]  }
   0x1   :  { %1813 = sst [smem:[#allocation20_spill]] %s1799_s1 }
   0x2   :  { %1814 = sst [smem:[#allocation21_spill]] %s1801_s3 }
   0x3   :  { %1815 = sst [smem:[#allocation22_spill]] %s1803_s5 }
   0x4   :  { %15 = vsyncpa [#allocation3], 0 }
   0x5   :  { %17 = vsyncpa [#allocation3 + $0x1], 0 }
   0x6   :  { %18 = vsyncpa [#allocation6], 0 }
   0x7   :  { %19 = vsyncpa [#allocation9], 0 }
   0x8   :  { %20 = vsyncpa [#allocation4], 0 }
   0x9   :  { %22 = vsyncpa [#allocation4 + $0x1], 0 }
   0xa   :  { %23 = vsyncpa [#allocation12], 0 }
   0xb   :  { %25 = vsyncpa [#allocation12 + $0x1], 0  ;;  %s1474_s30 = smov 0   ;;  %s1476_s10 = smov 0  }
   0xc   :  { %s1478_s11 = smov 0   ;;  %s1480_s12 = smov 0  }
   0xd LB: > { %s1495_s13 = sadd.s32 4294967295, %s1411_s12   ;;  %s1810_s14 = sadd.s32 4294967294, %s1411_s12   ;;  %s1411_s12 = sphi %s1480_s12, %s1842_s12   ;;  %s1407_s11 = sphi %s1478_s11, %s1841_s11   ;;  %s1403_s10 = sphi %s1476_s10, %s1840_s10   ;;  %s1399_s30 = sphi %s1474_s30, %s1839_s30  }
   0xe   : > { %p51_p0 = scmp.ne.s32.totalorder %s1403_s10, %s1399_s30  ;;  %p1808_p1 = scmp.eq.s32.totalorder %s1495_s13, 0 }
   0xf   : > { %p207_p3 = scmp.eq.s32.totalorder %s1810_s14, 1  ;;  %p904_p5 = scmp.ge.s32.totalorder %s1411_s12, 1 }
  0x10   : > { %p1506_p4 = por %p1808_p1, %p51_p0  ;;  %p266_p7 = scmp.lt.s32.totalorder %s1411_s12, 3 }
  0x11   : > { %p1511_p6 = por %p207_p3, %p51_p0  ;;  %s1413_s18 = smov [#allocation5]  }
  0x12   : > { %s1816_s15 = scalar_select %p1506_p4, 1, 0 }
  0x13   : > { %s1817_s16 = scalar_select %p1511_p6, 1, 0 }
  0x14   : > { %p1516_p8 = pnand %p904_p5, %p266_p7  ;;  %s278_s19 = sshll.u32 %s1413_s18, 4  ;;  %s279_s19 = int_to_ptr.vmem [resolvable:$true] %s278_s19 }
  0x15   : > { %s1414_s21 = smov [#allocation7]   ;;  %s1415_s23 = smov [#allocation8]  }
  0x16   : > { %s1818_s17 = scalar_select %p1516_p8, 1, 0 }
  0x17   : > { %p1106_p9 = pneg %p1516_p8  ;;  %s294_s22 = sshll.u32 %s1414_s21, 4  ;;  %s295_s22 = int_to_ptr.vmem [resolvable:$true] %s294_s22 }
  0x18   : > { %s310_s24 = sshll.u32 %s1415_s23, 4  ;;  %s1188_s25 = scalar_lea.vmem %s279_s19, 2048  ;;  %s311_s24 = int_to_ptr.vmem [resolvable:$true] %s310_s24 }
  0x19   : > { %p1525_p11 = pnand %p1106_p9, %p1808_p1  ;;  %p1189_p13 = scmp.ne.s32.totalorder %s279_s19, %s1188_s25 }
  0x1a   : > { %p1196_p5 = scmp.lt.s32.totalorder %s279_s19, %s279_s19  ;;  %p1197_p7 = scmp.lt.s32.totalorder %s1188_s25, %s1188_s25 }
  0x1b   : > { %p1179_p12 = pneg %p1525_p11 }
  0x1c   : > { %p1198_p9 = por %p1197_p7, %p1196_p5 }
  0x1d   : > { %p1191_p0 = pnand %p1189_p13, %p1179_p12 }
  0x1f   : > { %p1192_p3 = pneg %p1191_p0 }
  0x21   : > { %p1199_p10 = pnand %p1198_p9, %p1192_p3 }
  0x23   : > { %1202 = shalt.err (!%p1199_p10)
}
  0x24   : > { %s1416_s26 = smov 128   ;;  %s1417_s27 = smov 8  }
  0x25   : > { %s1820_s1 = sld [smem:[#allocation20_spill]]  ;;  %s1214_s18 = scalar_lea.vmem %s295_s22, 2048 }
  0x26   : > { %p1215_p1 = scmp.ne.s32.totalorder %s295_s22, %s1214_s18  ;;  %p1222_p2 = scmp.lt.s32.totalorder %s295_s22, %s295_s22 }
  0x27   : > { %p1223_p6 = scmp.lt.s32.totalorder %s1214_s18, %s1214_s18 }
  0x28   : > { %p1217_p13 = pnand %p1215_p1, %p1179_p12 }
  0x29   : > { %p1224_p5 = por %p1223_p6, %p1222_p2 }
  0x2a   : > { %p1218_p0 = pneg %p1217_p13 }
  0x2b   : > { %1109 = dma.hbm_to_vmem [thread:$0]  (!%p1525_p11), %s1820_s1, 2048, %s279_s19, [#allocation6], %s1416_s26, %s1416_s26, %s1417_s27  }
  0x2c   : > { %p1225_p3 = pnand %p1224_p5, %p1218_p0 }
  0x2e   : > { %1228 = shalt.err (!%p1225_p3)
}
  0x2f   : > { %s1821_s3 = sld [smem:[#allocation21_spill]]  ;;  %s1240_s19 = scalar_lea.vmem %s311_s24, 2048 }
  0x30   : > { %p1241_p10 = scmp.ne.s32.totalorder %s311_s24, %s1240_s19  ;;  %p1248_p9 = scmp.lt.s32.totalorder %s311_s24, %s311_s24 }
  0x31   : > { %p1249_p13 = scmp.lt.s32.totalorder %s1240_s19, %s1240_s19 }
  0x32   : > { %p1243_p7 = pnand %p1241_p10, %p1179_p12 }
  0x33   : > { %p1250_p4 = por %p1249_p13, %p1248_p9 }
  0x34   : > { %p1244_p1 = pneg %p1243_p7 }
  0x35   : > { %1112 = dma.hbm_to_vmem [thread:$0]  (!%p1525_p11), %s1821_s3, 2048, %s295_s22, [#allocation6], %s1416_s26, %s1416_s26, %s1417_s27  }
  0x36   : > { %p1251_p2 = pnand %p1250_p4, %p1244_p1 }
  0x38   : > { %1254 = shalt.err (!%p1251_p2)
}
  0x39   : > { %s1822_s5 = sld [smem:[#allocation22_spill]]  ;;  %s1556_s22 = sadd.s32 1, %s1411_s12  }
  0x3a   : > { %s35_s29 = ssub.s32 %s1411_s12, %s1556_s22  ;;  %s38_s20 = sadd.s32 1, %s1407_s11 }
  0x3b   : > { %p36_p4 = scmp.eq.s32.totalorder %s35_s29, 0  ;;  %p45_p6 = scmp.ne.s32.totalorder %s1407_s11, %s1403_s10 }
  0x3c   : > { %p46_p12 = scmp.eq.s32.totalorder %s1411_s12, 0  ;;  %p1133_p0 = scmp.lt.s32.totalorder %s1411_s12, 2 }
  0x3d   : > { %s1566_s18 = scalar_select %p36_p4, %s1407_s11, %s38_s20  }
  0x3e   : > { %p47_p5 = por %p46_p12, %p45_p6  ;;  %p1824_p3 = scmp.eq.s32.totalorder %s1495_s13, 1 }
  0x3f   : > { %1115 = dma.hbm_to_vmem [thread:$0]  (!%p1525_p11), %s1822_s5, 2048, %s311_s24, [#allocation9], %s1416_s26, %s1416_s26, %s1417_s27  }
  0x40   : > { %1823 = sst [smem:[#allocation19_spill]] %s1566_s18  ;;  %p1570_p10 = por %p1824_p3, %p45_p6 }
  0x41   : > { %s327_s23 = sand.u32 1, %s1407_s11   ;;  %s910_s19 = sshll.u32 %s1411_s12, 7 }
  0x42   : > { %s1825_s21 = scalar_select %p1570_p10, 1, 0 }
  0x43   : > { %s909_s24 = sshll.u32 %s327_s23, 3  ;;  %s1579_s25 = scalar_lea.hbm %s1798_s0, %s910_s19 }
  0x44   : > { %s331_s28 = scalar_lea.vmem [#allocation2], %s909_s24  ;;  %p1581_p11 = pnand %p1133_p0, %p47_p5 }
  0x45   : > { %s338_s29 = sshll.u32 %s331_s28, 4  ;;  %s328_s14 = scalar_lea.sflag [#allocation3], %s327_s23  ;;  %s339_s29 = int_to_ptr.vmem [resolvable:$true] %s338_s29 }
  0x46   : > { %s1255_s1 = scalar_lea.hbm %s1579_s25, 128  ;;  %p1257_p1 = pneg %p1581_p11 }
  0x47   : > { %p1256_p7 = scmp.ne.s32.totalorder %s1579_s25, %s1255_s1  ;;  %s1260_s27 = scalar_lea.hbm %s1798_s0, 256 }
  0x48   : > { %p1261_p2 = scmp.lt.s32.totalorder %s1579_s25, %s1798_s0  ;;  %p1262_p4 = scmp.lt.s32.totalorder %s1260_s27, %s1255_s1 }
  0x49   : > { %p1258_p9 = pnand %p1257_p1, %p1256_p7 }
  0x4a   : > { %p1263_p6 = por %p1262_p4, %p1261_p2 }
  0x4b   : > { %p1259_p13 = pneg %p1258_p9 }
  0x4d   : > { %p1264_p12 = pnand %p1263_p6, %p1259_p13 }
  0x4f   : > { %1267 = shalt.err (!%p1264_p12)
}
  0x50   : > { %s1268_s28 = scalar_lea.vmem %s339_s29, 128  ;;  %s1418_s23 = smov [#allocation2]  }
  0x51   : > { %p1269_p0 = scmp.ne.s32.totalorder %s339_s29, %s1268_s28  ;;  %s1273_s5 = sshll.u32 %s1418_s23, 4  ;;  %s1274_s5 = int_to_ptr.vmem [resolvable:$false] %s1273_s5 }
  0x52   : > { %s1275_s18 = scalar_lea.vmem %s1274_s5, 256  ;;  %p1276_p7 = scmp.lt.s32.totalorder %s339_s29, %s1274_s5 }
  0x53   : > { %p1271_p5 = pnand %p1269_p0, %p1257_p1  ;;  %p1277_p9 = scmp.lt.s32.totalorder %s1275_s18, %s1268_s28 }
  0x55   : > { %p1272_p3 = pneg %p1271_p5  ;;  %p1278_p10 = por %p1277_p9, %p1276_p7 }
  0x57   : > { %p1279_p8 = pnand %p1278_p10, %p1272_p3 }
  0x59   : > { %1282 = shalt.err (!%p1279_p8)
}
  0x5a   : > { %1119 = dma.hbm_to_vmem [thread:$0]  (!%p1581_p11), %s1579_s25, 128, %s339_s29, %s328_s14  }
  0x5b   : > { %p1827_p13 = scmp.ne.s32.totalorder %s1818_s17, 0 }
  0x5c   : > { %s1602_s1 = sand.u32 (!%p1827_p13), 1, %s1403_s10   ;;  %p1828_p10 = scmp.ne.s32.totalorder (!%p1827_p13), %s1816_s15, 0 }
  0x5d   : > { %347 = sbr.rel (%p1827_p13) target bundleno = 393 (0x189), region = 48  ;;  %s1605_s3 = sshll.u32 (!%p1827_p13), %s1602_s1, 3 }
  0x5e   : > { %s350_s5 = scalar_lea.sflag (!%p1827_p13), [#allocation3], %s1602_s1  ;;  %s353_s18 = scalar_lea.vmem (!%p1827_p13), [#allocation2], %s1605_s3 }
  0x62   : > { %1378 = dma.done.wait (%p1828_p10), %s350_s5, 128  }
  0x63   : > { %1380 = vsyncadd (%p1828_p10), %s350_s5, 4294967168  ;;  %p1829_p8 = scmp.eq.s32.totalorder %s1495_s13, 0 }
  0x65   : > { %1382 = dma.done.wait (%p1829_p8), [#allocation6], 4096   ;;  %p1830_p11 = pmov %p1829_p8 }
  0x66   : > { %p1831_p1 = pmov %p1829_p8 }
  0x67   : > { %1384 = vsyncadd (%p1830_p11), [#allocation6], 4294963200 }
  0x68   : > { %1386 = dma.done.wait (%p1831_p1), [#allocation9], 2048   ;;  %p1832_p2 = pmov %p1831_p1 }
  0x69   : > { %v1419_v0 = vmov 0.0   ;;  %vm1420_vm0 = vmmov 0   ;;  %v426_v1 = vld [vmem:[#allocation5 + $0x78] sm:$0xff]  ;;  %v425_v2 = vld [vmem:[#allocation5 + $0x70] sm:$0xff]  ;;  %v424_v3 = vld [vmem:[#allocation5 + $0x68] sm:$0xff]  ;;  %s1686_s17 = sshll.u32 %s1495_s13, 7 }
  0x6a   : > { %1388 = vsyncadd (%p1832_p2), [#allocation9], 4294965248  ;;  %981 = vmatprep.subr.mxu0 %v1419_v0  ;;  %1016 = vmatprep.subr.mxu1 %v1419_v0  ;;  %v423_v4 = vld [vmem:[#allocation5 + $0x60] sm:$0xff]  ;;  %v520_v5 = vld [vmem:[#allocation7 + $0x78] sm:$0xff]  ;;  %s395_s25 = scalar_lea.vmem [#allocation10], %s1605_s3  ;;  %s1693_s26 = scalar_lea.hbm %s1805_s7, %s1686_s17 }
  0x6b   : > { %1013 = vmatprep.mubr.msk.f32.mxu0 %vm1420_vm0, %v1419_v0  ;;  %1048 = vmatprep.mubr.msk.f32.mxu1 %vm1420_vm0, %v1419_v0  ;;  %v422_v6 = vld [vmem:[#allocation5 + $0x58] sm:$0xff]  ;;  %v519_v7 = vld [vmem:[#allocation7 + $0x70] sm:$0xff]  ;;  %v518_v8 = vld [vmem:[#allocation7 + $0x68] sm:$0xff]  ;;  %s717_s29 = sshll.u32 %s395_s25, 4  ;;  %s402_s24 = scalar_lea.vmem [#allocation11], %s1605_s3  ;;  %s1695_s29 = int_to_ptr.vmem [resolvable:$true] %s717_s29 }
  0x6c   : > { %982 = vmatpush3.msra.mxu0 %v426_v1  ;;  %1017 = vmatpush3.msra.mxu1 %v520_v5  ;;  %v421_v9 = vld [vmem:[#allocation5 + $0x50] sm:$0xff]  ;;  %v517_v10 = vld [vmem:[#allocation7 + $0x60] sm:$0xff]  ;;  %v420_v11 = vld [vmem:[#allocation5 + $0x48] sm:$0xff]  ;;  %s1701_s28 = sshll.u32 %s402_s24, 4  ;;  %s1283_s14 = scalar_lea.vmem %s1695_s29, 128  ;;  %s731_s28 = int_to_ptr.vmem [resolvable:$true] %s1701_s28 }
  0x6d   : > { %983 = vmatprep.subr.mxu0 %v1419_v0  ;;  %1018 = vmatprep.subr.mxu1 %v1419_v0  ;;  %v516_v12 = vld [vmem:[#allocation7 + $0x58] sm:$0xff]  ;;  %v419_v13 = vld [vmem:[#allocation5 + $0x40] sm:$0xff]  ;;  %v515_v14 = vld [vmem:[#allocation7 + $0x50] sm:$0xff]  ;;  %p1284_p4 = scmp.ne.s32.totalorder %s1695_s29, %s1283_s14  ;;  %p1833_p6 = scmp.ne.s32.totalorder %s1825_s21, 0 }
  0x6e   : > { %984 = vmatpush3.msra.mxu0 %v425_v2  ;;  %1019 = vmatpush3.msra.mxu1 %v519_v7  ;;  %v418_v15 = vld [vmem:[#allocation5 + $0x38] sm:$0xff]  ;;  %v514_v16 = vld [vmem:[#allocation7 + $0x48] sm:$0xff]  ;;  %v417_v17 = vld [vmem:[#allocation5 + $0x30] sm:$0xff]  ;;  %s1421_s15 = smov [#allocation10]  }
  0x6f   : > { %985 = vmatprep.subr.mxu0 %v1419_v0  ;;  %1020 = vmatprep.subr.mxu1 %v1419_v0  ;;  %v513_v18 = vld [vmem:[#allocation7 + $0x40] sm:$0xff]  ;;  %v416_v19 = vld [vmem:[#allocation5 + $0x28] sm:$0xff]  ;;  %v512_v20 = vld [vmem:[#allocation7 + $0x38] sm:$0xff]  ;;  %p1285_p12 = pnand %p1284_p4, %p1833_p6  ;;  %s1287_s20 = sshll.u32 %s1421_s15, 4  ;;  %s1288_s20 = int_to_ptr.vmem [resolvable:$false] %s1287_s20 }
  0x70   : > { %986 = vmatpush3.msra.mxu0 %v424_v3  ;;  %1021 = vmatpush3.msra.mxu1 %v518_v8  ;;  %v415_v21 = vld [vmem:[#allocation5 + $0x20] sm:$0xff]  ;;  %v511_v22 = vld [vmem:[#allocation7 + $0x30] sm:$0xff]  ;;  %v414_v23 = vld [vmem:[#allocation5 + $0x18] sm:$0xff]  ;;  %s1289_s19 = scalar_lea.vmem %s1288_s20, 256  ;;  %p1290_p5 = scmp.lt.s32.totalorder %s1695_s29, %s1288_s20 }
  0x71   : > { %987 = vmatprep.subr.mxu0 %v1419_v0  ;;  %1022 = vmatprep.subr.mxu1 %v1419_v0  ;;  %v510_v24 = vld [vmem:[#allocation7 + $0x28] sm:$0xff]  ;;  %v413_v25 = vld [vmem:[#allocation5 + $0x10] sm:$0xff]  ;;  %v509_v26 = vld [vmem:[#allocation7 + $0x20] sm:$0xff]  ;;  %p1286_p0 = pneg %p1285_p12  ;;  %p1291_p3 = scmp.lt.s32.totalorder %s1289_s19, %s1283_s14 }
  0x72   : > { %988 = vmatpush3.msra.mxu0 %v423_v4  ;;  %1023 = vmatpush3.msra.mxu1 %v517_v10  ;;  %v412_v27 = vld [vmem:[#allocation5 + $0x8] sm:$0xff]  ;;  %v508_v28 = vld [vmem:[#allocation7 + $0x18] sm:$0xff]  ;;  %v411_v29 = vld [vmem:[#allocation5] sm:$0xff] }
  0x73   : > { %989 = vmatprep.subr.mxu0 %v1419_v0  ;;  %1024 = vmatprep.subr.mxu1 %v1419_v0  ;;  %v1654_v30 = vld [vmem:[%s353_s18] sm:$0xff]  ;;  %v506_v34 = vld [vmem:[#allocation7 + $0x8] sm:$0xff]  ;;  %v505_v36 = vld [vmem:[#allocation7] sm:$0xff]  ;;  %s694_s18 = scalar_lea.sflag [#allocation4], %s1602_s1  ;;  %p1292_p7 = por %p1291_p3, %p1290_p5 }
  0x74   : > { %990 = vmatpush3.msra.mxu0 %v422_v6  ;;  %1025 = vmatpush3.msra.mxu1 %v516_v12  ;;  %v614_v31 = vld [vmem:[#allocation8 + $0x78] sm:$0xff]  ;;  %v507_v32 = vld [vmem:[#allocation7 + $0x10] sm:$0xff]  ;;  %v612_v35 = vld [vmem:[#allocation8 + $0x68] sm:$0xff] }
  0x75   : > { %991 = vmatprep.subr.mxu0 %v1419_v0  ;;  %1026 = vmatprep.subr.mxu1 %v1419_v0  ;;  %v613_v33 = vld [vmem:[#allocation8 + $0x70] sm:$0xff]  ;;  %v611_v37 = vld [vmem:[#allocation8 + $0x60] sm:$0xff]  ;;  %v610_v38 = vld [vmem:[#allocation8 + $0x58] sm:$0xff]  ;;  %p1293_p9 = pnand %p1292_p7, %p1286_p0 }
  0x76   : > { %992 = vmatpush3.msra.mxu0 %v421_v9  ;;  %1027 = vmatpush3.msra.mxu1 %v515_v14  ;;  %v609_v39 = vld [vmem:[#allocation8 + $0x50] sm:$0xff]  ;;  %v608_v40 = vld [vmem:[#allocation8 + $0x48] sm:$0xff]  ;;  %v607_v41 = vld [vmem:[#allocation8 + $0x40] sm:$0xff] }
  0x77   : > { %993 = vmatprep.subr.mxu0 %v1419_v0  ;;  %1028 = vmatprep.subr.mxu1 %v1419_v0  ;;  %v606_v42 = vld [vmem:[#allocation8 + $0x38] sm:$0xff]  ;;  %v605_v43 = vld [vmem:[#allocation8 + $0x30] sm:$0xff]  ;;  %v604_v44 = vld [vmem:[#allocation8 + $0x28] sm:$0xff] }
  0x78   : > { %994 = vmatpush3.msra.mxu0 %v420_v11  ;;  %1029 = vmatpush3.msra.mxu1 %v514_v16  ;;  %v603_v45 = vld [vmem:[#allocation8 + $0x20] sm:$0xff]  ;;  %v602_v46 = vld [vmem:[#allocation8 + $0x18] sm:$0xff]  ;;  %v601_v47 = vld [vmem:[#allocation8 + $0x10] sm:$0xff] }
  0x79   : > { %995 = vmatprep.subr.mxu0 %v1419_v0  ;;  %1030 = vmatprep.subr.mxu1 %v1419_v0  ;;  %v600_v48 = vld [vmem:[#allocation8 + $0x8] sm:$0xff]  ;;  %v599_v49 = vld [vmem:[#allocation8] sm:$0xff]  ;;  %v919_v50 = vld [vmem:[%s1800_s2] ss:$0 sm:$0xff] }
  0x7a   : > { %996 = vmatpush3.msra.mxu0 %v419_v13  ;;  %1031 = vmatpush3.msra.mxu1 %v513_v18  ;;  %v920_v54 = vld [vmem:[%s1802_s4] ss:$0 sm:$0xff] }
  0x7b   : > { %997 = vmatprep.subr.mxu0 %v1419_v0  ;;  %1032 = vmatprep.subr.mxu1 %v1419_v0 }
  0x7c   : > { %998 = vmatpush3.msra.mxu0 %v418_v15  ;;  %1033 = vmatpush3.msra.mxu1 %v512_v20 }
  0x7d   : > { %999 = vmatprep.subr.mxu0 %v1419_v0  ;;  %1034 = vmatprep.subr.mxu1 %v1419_v0 }
  0x7e   : > { %1000 = vmatpush3.msra.mxu0 %v417_v17  ;;  %1035 = vmatpush3.msra.mxu1 %v511_v22 }
  0x7f   : > { %1001 = vmatprep.subr.mxu0 %v1419_v0  ;;  %1036 = vmatprep.subr.mxu1 %v1419_v0 }
  0x80   : > { %1002 = vmatpush3.msra.mxu0 %v416_v19  ;;  %1037 = vmatpush3.msra.mxu1 %v510_v24 }
  0x81   : > { %1003 = vmatprep.subr.mxu0 %v1419_v0  ;;  %1038 = vmatprep.subr.mxu1 %v1419_v0 }
  0x82   : > { %1004 = vmatpush3.msra.mxu0 %v415_v21  ;;  %1039 = vmatpush3.msra.mxu1 %v509_v26 }
  0x83   : > { %1005 = vmatprep.subr.mxu0 %v1419_v0  ;;  %1040 = vmatprep.subr.mxu1 %v1419_v0 }
  0x84   : > { %1006 = vmatpush3.msra.mxu0 %v414_v23  ;;  %1041 = vmatpush3.msra.mxu1 %v508_v28 }
  0x85   : > { %1007 = vmatprep.subr.mxu0 %v1419_v0  ;;  %1042 = vmatprep.subr.mxu1 %v1419_v0 }
  0x86   : > { %1008 = vmatpush3.msra.mxu0 %v413_v25  ;;  %1043 = vmatpush3.msra.mxu1 %v507_v32 }
  0x87   : > { %1009 = vmatprep.subr.mxu0 %v1419_v0  ;;  %1044 = vmatprep.subr.mxu1 %v1419_v0 }
  0x88   : > { %1010 = vmatpush3.msra.mxu0 %v412_v27  ;;  %1045 = vmatpush3.msra.mxu1 %v506_v34 }
  0x89   : > { %1011 = vmatprep.subr.mxu0 %v1419_v0  ;;  %1046 = vmatprep.subr.mxu1 %v1419_v0 }
  0x8a   : > { %1012 = vmatpush3.msra.mxu0 %v411_v29  ;;  %1047 = vmatpush3.msra.mxu1 %v505_v36 }
  0x8b   : > { %1014 = vmatmul.mubr.f32.vlgmr.msra.gmra.mxu0 %v1654_v30  ;;  %1051 = vmatprep.subr.mxu0 %v1419_v0 }
  0x8c   : > { %1052 = vmatpush3.msra.mxu0 %v614_v31  ;;  %1049 = vmatmul.mubr.f32.vlgmr.msra.gmra.mxu1 %v1654_v30 }
  0x8d   : > { %1053 = vmatprep.subr.mxu0 %v1419_v0  ;;  %1083 = vmatprep.mubr.msk.f32.mxu0 %vm1420_vm0, %v1419_v0 }
  0x8e   : > { %1054 = vmatpush3.msra.mxu0 %v613_v33 }
  0x8f   : > { %1055 = vmatprep.subr.mxu0 %v1419_v0 }
  0x90   : > { %1056 = vmatpush3.msra.mxu0 %v612_v35 }
  0x91   : > { %1057 = vmatprep.subr.mxu0 %v1419_v0 }
  0x92   : > { %1058 = vmatpush3.msra.mxu0 %v611_v37 }
  0x93   : > { %1059 = vmatprep.subr.mxu0 %v1419_v0 }
  0x94   : > { %1060 = vmatpush3.msra.mxu0 %v610_v38 }
  0x95   : > { %1061 = vmatprep.subr.mxu0 %v1419_v0 }
  0x96   : > { %1062 = vmatpush3.msra.mxu0 %v609_v39 }
  0x97   : > { %1063 = vmatprep.subr.mxu0 %v1419_v0 }
  0x98   : > { %1064 = vmatpush3.msra.mxu0 %v608_v40 }
  0x99   : > { %1065 = vmatprep.subr.mxu0 %v1419_v0 }
  0x9a   : > { %1066 = vmatpush3.msra.mxu0 %v607_v41 }
  0x9b   : > { %1067 = vmatprep.subr.mxu0 %v1419_v0 }
  0x9c   : > { %1068 = vmatpush3.msra.mxu0 %v606_v42 }
  0x9d   : > { %1069 = vmatprep.subr.mxu0 %v1419_v0 }
  0x9e   : > { %1070 = vmatpush3.msra.mxu0 %v605_v43 }
  0x9f   : > { %1071 = vmatprep.subr.mxu0 %v1419_v0 }
  0xa0   : > { %1072 = vmatpush3.msra.mxu0 %v604_v44 }
  0xa1   : > { %1073 = vmatprep.subr.mxu0 %v1419_v0 }
  0xa2   : > { %1074 = vmatpush3.msra.mxu0 %v603_v45 }
  0xa3   : > { %1075 = vmatprep.subr.mxu0 %v1419_v0 }
  0xa4   : > { %1076 = vmatpush3.msra.mxu0 %v602_v46 }
  0xa5   : > { %1077 = vmatprep.subr.mxu0 %v1419_v0 }
  0xa6   : > { %1078 = vmatpush3.msra.mxu0 %v601_v47 }
  0xa7   : > { %1079 = vmatprep.subr.mxu0 %v1419_v0 }
  0xa8   : > { %1080 = vmatpush3.msra.mxu0 %v600_v48 }
  0xa9   : > { %1081 = vmatprep.subr.mxu0 %v1419_v0 }
  0xaa   : > { %1082 = vmatpush3.msra.mxu0 %v599_v49 }
  0xab   : > { %1084 = vmatmul.mubr.f32.vlgmr.msra.gmra.mxu0 %v1654_v30 }
 0x14b   : > { %v500_v51 = vpop.f32.mrf.mxu0 }
 0x14c   : > { %v501_v52 = vadd.f32 %v919_v50, %v500_v51 }
 0x14d   : > { %v1015_v53 = vpop.f32.mrf.mxu0 }
 0x14e   : > { %504 = vst [vmem:[%s395_s25] sm:$0xff] %v501_v52 }
 0x14f   : > { %1296 = shalt.err (!%p1293_p9)
}
 0x150   : > { %s1297_s25 = scalar_lea.hbm %s1693_s26, 128  ;;  %s1301_s5 = scalar_lea.hbm %s1805_s7, 256 }
 0x151   : > { %p1298_p13 = scmp.ne.s32.totalorder %s1693_s26, %s1297_s25  ;;  %p1302_p11 = scmp.lt.s32.totalorder %s1693_s26, %s1805_s7 }
 0x152   : > { %p1303_p1 = scmp.lt.s32.totalorder %s1301_s5, %s1297_s25 }
 0x153   : > { %p1299_p10 = pnand %p1298_p13, %p1833_p6 }
 0x154   : > { %p1304_p2 = por %p1303_p1, %p1302_p11 }
 0x155   : > { %p1300_p8 = pneg %p1299_p10 }
 0x157   : > { %p1305_p4 = pnand %p1304_p2, %p1300_p8 }
 0x159   : > { %1308 = shalt.err (!%p1305_p4)
}
 0x15a   : > { %1100 = dma.vmem_to_hbm [thread:$0]  (%p1833_p6), %s1695_s29, 128, %s1693_s26, %s694_s18   ;;  %v594_v55 = vpop.f32.mrf.mxu1 }
 0x15b   : > { %v595_v56 = vadd.f32 %v920_v54, %v594_v55  ;;  %s1731_s27 = scalar_lea.hbm %s1806_s8, %s1686_s17  ;;  %s1834_s19 = sand.u32 1, %s1495_s13  }
 0x15c   : > { %v1050_v57 = vpop.f32.mrf.mxu1  ;;  %s1738_s25 = scalar_lea.sflag [#allocation12], %s1834_s19  ;;  %s1309_s1 = scalar_lea.vmem %s731_s28, 128 }
 0x15d   : > { %598 = vst [vmem:[%s402_s24] sm:$0xff] %v595_v56  ;;  %p1310_p12 = scmp.ne.s32.totalorder %s731_s28, %s1309_s1  ;;  %s1422_s29 = smov [#allocation11]  }
 0x15e   : > { %s1313_s26 = sshll.u32 %s1422_s29, 4  ;;  %s1314_s26 = int_to_ptr.vmem [resolvable:$false] %s1313_s26 }
 0x15f   : > { %p1311_p0 = pnand %p1310_p12, %p1833_p6  ;;  %s1315_s18 = scalar_lea.vmem %s1314_s26, 256 }
 0x160   : > { %p1316_p3 = scmp.lt.s32.totalorder %s731_s28, %s1314_s26  ;;  %p1317_p7 = scmp.lt.s32.totalorder %s1315_s18, %s1309_s1 }
 0x161   : > { %p1312_p5 = pneg %p1311_p0 }
 0x162   : > { %p1318_p9 = por %p1317_p7, %p1316_p3 }
 0x164   : > { %p1319_p13 = pnand %p1318_p9, %p1312_p5 }
 0x166   : > { %1322 = shalt.err (!%p1319_p13)
}
 0x167   : > { %s1323_s13 = scalar_lea.hbm %s1731_s27, 128  ;;  %s1327_s5 = scalar_lea.hbm %s1806_s8, 256 }
 0x168   : > { %p1324_p10 = scmp.ne.s32.totalorder %s1731_s27, %s1323_s13  ;;  %p1328_p1 = scmp.lt.s32.totalorder %s1731_s27, %s1806_s8 }
 0x169   : > { %p1329_p2 = scmp.lt.s32.totalorder %s1327_s5, %s1323_s13 }
 0x16a   : > { %p1325_p8 = pnand %p1324_p10, %p1833_p6 }
 0x16b   : > { %p1330_p4 = por %p1329_p2, %p1328_p1 }
 0x16c   : > { %p1326_p11 = pneg %p1325_p8 }
 0x16e   : > { %p1331_p12 = pnand %p1330_p4, %p1326_p11 }
 0x170   : > { %1334 = shalt.err (!%p1331_p12)
}
 0x171   : > { %1101 = dma.vmem_to_hbm [thread:$0]  (%p1833_p6), %s731_s28, 128, %s1731_s27, %s1738_s25   ;;  %v921_v58 = vld [vmem:[%s1804_s6] ss:$0 sm:$0xff]  ;;  %v688_v59 = vpop.f32.mrf.mxu0 }
 0x172   : > { %s409_s1 = scalar_lea.vmem [#allocation13], %s1605_s3  ;;  %v689_v60 = vadd.f32 %v921_v58, %v688_v59  ;;  %s741_s13 = scalar_lea.hbm %s1807_s9, %s1686_s17 }
 0x173   : > { %s743_s29 = sshll.u32 %s409_s1, 4  ;;  %v1085_v61 = vpop.f32.mrf.mxu0  ;;  %s1423_s28 = smov [#allocation13]   ;;  %s744_s29 = int_to_ptr.vmem [resolvable:$true] %s743_s29 }
 0x174   : > { %692 = vst [vmem:[%s409_s1] sm:$0xff] %v689_v60  ;;  %s1335_s24 = scalar_lea.vmem %s744_s29, 128  ;;  %s1339_s27 = sshll.u32 %s1423_s28, 4  ;;  %s1340_s27 = int_to_ptr.vmem [resolvable:$false] %s1339_s27 }
 0x175   : > { %p1336_p0 = scmp.ne.s32.totalorder %s744_s29, %s1335_s24  ;;  %s1341_s23 = scalar_lea.vmem %s1340_s27, 256 }
 0x176   : > { %p1342_p7 = scmp.lt.s32.totalorder %s744_s29, %s1340_s27  ;;  %p1343_p9 = scmp.lt.s32.totalorder %s1341_s23, %s1335_s24 }
 0x177   : > { %p1337_p5 = pnand %p1336_p0, %p1833_p6 }
 0x178   : > { %p1344_p13 = por %p1343_p9, %p1342_p7 }
 0x179   : > { %p1338_p3 = pneg %p1337_p5 }
 0x17b   : > { %p1345_p10 = pnand %p1344_p13, %p1338_p3 }
 0x17d   : > { %1348 = shalt.err (!%p1345_p10)
}
 0x17e   : > { %s1349_s3 = scalar_lea.hbm %s741_s13, 128  ;;  %s1353_s15 = scalar_lea.hbm %s1807_s9, 256 }
 0x17f   : > { %p1350_p8 = scmp.ne.s32.totalorder %s741_s13, %s1349_s3  ;;  %p1354_p2 = scmp.lt.s32.totalorder %s741_s13, %s1807_s9 }
 0x180   : > { %p1355_p4 = scmp.lt.s32.totalorder %s1353_s15, %s1349_s3 }
 0x181   : > { %p1351_p11 = pnand %p1350_p8, %p1833_p6 }
 0x182   : > { %p1356_p12 = por %p1355_p4, %p1354_p2 }
 0x183   : > { %p1352_p1 = pneg %p1351_p11 }
 0x185   : > { %p1357_p0 = pnand %p1356_p12, %p1352_p1 }
 0x187   : > { %1360 = shalt.err (!%p1357_p0)
}
 0x188   : > { %1102 = dma.vmem_to_hbm [thread:$0]  (%p1833_p6), %s744_s29, 128, %s741_s13, %s1738_s25  }
 0x189 PF: > { %s755_s19 = sand.u32 1, %s1399_s30   ;;  %p1835_p5 = scmp.ne.s32.totalorder %s1817_s16, 0 }
 0x18a   : > { %p1836_p3 = scmp.ge.s32.totalorder %s1411_s12, 2  ;;  %s756_s1 = scalar_lea.sflag [#allocation4], %s755_s19 }
 0x18c   : > { %p1121_p7 = pnand %p1836_p3, %p1835_p5 }
 0x18e   : > { %p1122_p9 = pneg %p1121_p7 }
 0x190   : > { %1390 = dma.done.wait (%p1122_p9), %s756_s1, 128  }
 0x191   : > { %1392 = vsyncadd (%p1122_p9), %s756_s1, 4294967168  ;;  %s1837_s26 = sadd.s32 4294967294, %s1411_s12  }
 0x192   : > { %s764_s18 = sand.u32 1, %s1837_s26  }
 0x193   : > { %s765_s24 = scalar_lea.sflag [#allocation12], %s764_s18 }
 0x194   : > { %1394 = dma.done.wait (%p1122_p9), %s765_s24, 256  }
 0x195   : > { %1396 = vsyncadd (%p1122_p9), %s765_s24, 4294967040  ;;  %s1838_s21 = sld [smem:[#allocation19_spill]]  ;;  %p28_p6 = scmp.ge.s32.totalorder %s1556_s22, 4  }
 0x196   : > { %s1839_s30 = smov %s1403_s10  ;;  %s1840_s10 = smov %s1407_s11 }
 0x197   : > { %s1842_s12 = smov %s1556_s22  ;;  %30 = sbr.rel (!%p28_p6) target bundleno = 13 (0xd), region = 137 }
 0x19b   : > { %s1841_s11 = smov %s1838_s21 }
 0x19c   :  { %779 = vsyncpa [#allocation3], 1 }
 0x19d   :  { %781 = vsyncpa [#allocation3 + $0x1], 1 }
 0x19e   :  { %782 = vsyncpa [#allocation6], 1 }
 0x19f   :  { %783 = vsyncpa [#allocation9], 1 }
 0x1a0   :  { %784 = vsyncpa [#allocation4], 1 }
 0x1a1   :  { %786 = vsyncpa [#allocation4 + $0x1], 1 }
 0x1a2   :  { %787 = vsyncpa [#allocation12], 1 }
 0x1a3   :  { %789 = vsyncpa [#allocation12 + $0x1], 1 }

</bundles_post_ra>
